<compile_context>
chip_gen: v6e
topology: v6e:2x2x1
jax: 0.10.0
libtpu: 0.0.40
codegen_flags: <defaults>
</compile_context>

<pallas_src>
import jax
import jax.numpy as jnp
from jax.experimental import pallas as pl
from jax.experimental.pallas import tpu as pltpu

# ---- small config consistent with SingleLayerConfig (N_ORN*dup -> N_CLASS)
N_ORN = 8
N_ORN_DUPLICATION = 2
N_CLASS = 8
BATCH = 4
N_ORN_TOTAL = N_ORN * N_ORN_DUPLICATION   # in_features of the linear layer


def single_layer_fwd_kernel(x_ref, tgt_ref, p_ref, out_ref):
    """Fused: ORN duplication -> linear -> cross-entropy loss + accuracy."""
    x = x_ref[...]                                            # (B, N_ORN) f32

    # --- ORN duplication in-kernel (torch `x.repeat(1, dup)`): lane concat.
    act0 = jnp.concatenate([x] * N_ORN_DUPLICATION, axis=1)   # (B, n_orn)

    # --- linear layer: packed slab rows [0:n_orn) = W^T, row n_orn = bias.
    w = p_ref[pl.ds(0, N_ORN_TOTAL), :]                       # (n_orn, N_CLASS)
    b = p_ref[pl.ds(N_ORN_TOTAL, 1), :]                       # (1, N_CLASS)
    y = jnp.dot(act0, w, preferred_element_type=jnp.float32) + b   # (B, N_CLASS)

    # --- cross-entropy (mean reduction) + accuracy, all in-kernel.
    tgt = tgt_ref[...]                                        # (B, 1) int32
    cls_idx = jax.lax.broadcasted_iota(jnp.int32, (BATCH, N_CLASS), 1)
    onehot = (cls_idx == tgt).astype(jnp.float32)             # (B, N_CLASS)

    m = jnp.max(y, axis=1, keepdims=True)                     # (B, 1)
    logz = m + jnp.log(jnp.sum(jnp.exp(y - m), axis=1, keepdims=True))
    picked = jnp.sum(y * onehot, axis=1, keepdims=True)       # y[i, target[i]]
    loss_11 = jnp.sum(logz - picked, axis=0, keepdims=True)[:, 0:1] / BATCH

    # argmax (first max index, matches torch.max) without jnp.argmax
    is_max = y == m
    pred = jnp.min(jnp.where(is_max, cls_idx, N_CLASS), axis=1, keepdims=True)
    correct = (pred == tgt).astype(jnp.float32)               # (B, 1)
    acc_11 = jnp.sum(correct, axis=0, keepdims=True) / BATCH  # (1, 1)

    # --- pack the two scalars into one dense (8,128) vreg-sized slab:
    #     column 0 = loss, column 1 = acc, rest zero (single unmasked store).
    lane = jax.lax.broadcasted_iota(jnp.int32, (8, 128), 1)
    out = jnp.where(lane == 0, loss_11,
                    jnp.where(lane == 1, acc_11, jnp.float32(0.0)))
    out_ref[...] = out


def init_params(key):
    """nn.Linear(n_orn, N_CLASS) default init, pre-packed into one slab.

    Weight ~ U(-1/sqrt(fan_in), 1/sqrt(fan_in)), bias likewise.
    Slab layout: rows [0, n_orn) = W^T (in, out), row n_orn = bias.
    Packing (and the transpose) happens ONCE here, outside the per-call path.
    """
    kw, kb = jax.random.split(key)
    bound = 1.0 / (N_ORN_TOTAL ** 0.5)
    w = jax.random.uniform(kw, (N_CLASS, N_ORN_TOTAL), dtype=jnp.float32,
                           minval=-bound, maxval=bound)
    b = jax.random.uniform(kb, (N_CLASS,), dtype=jnp.float32,
                           minval=-bound, maxval=bound)
    slab = jnp.concatenate([w.T, b[None, :]], axis=0)         # (n_orn+1, N_CLASS)
    return slab


@jax.jit
def single_layer_forward(x, target, param_slab):
    vmem = pl.BlockSpec(memory_space=pltpu.MemorySpace.VMEM)
    out = pl.pallas_call(
        single_layer_fwd_kernel,
        out_shape=jax.ShapeDtypeStruct((8, 128), jnp.float32),
        in_specs=[vmem, vmem, vmem],
        out_specs=vmem,
    )(x, target[:, None].astype(jnp.int32), param_slab)
    return {'loss': out[0, 0], 'acc': out[0, 1]}


def _reference_forward(x, target, param_slab):
    """Pure-JAX reference mirroring the torch module, for a sanity check."""
    w_t = param_slab[:N_ORN_TOTAL, :]
    b = param_slab[N_ORN_TOTAL, :]
    act0 = jnp.tile(x, (1, N_ORN_DUPLICATION))
    y = act0 @ w_t + b
    logz = jax.scipy.special.logsumexp(y, axis=1)
    picked = jnp.take_along_axis(y, target[:, None], axis=1)[:, 0]
    loss = jnp.mean(logz - picked)
    acc = jnp.mean((jnp.argmax(y, axis=1) == target).astype(jnp.float32))
    return loss, acc


if __name__ == "__main__":
    key = jax.random.PRNGKey(0)
    kx, kt, kp = jax.random.split(key, 3)
    # ORN activations are non-negative odor responses
    x = jax.random.uniform(kx, (BATCH, N_ORN), dtype=jnp.float32)
    target = jax.random.randint(kt, (BATCH,), 0, N_CLASS, dtype=jnp.int32)
    param_slab = init_params(kp)

    results = single_layer_forward(x, target, param_slab)
    jax.block_until_ready(results)

    assert results['loss'].shape == ()
    assert results['acc'].shape == ()

    ref_loss, ref_acc = _reference_forward(x, target, param_slab)
    assert jnp.allclose(results['loss'], ref_loss, rtol=1e-4, atol=1e-4)
    assert jnp.allclose(results['acc'], ref_acc, rtol=1e-4, atol=1e-4)

    print("KERNEL_OK")
</pallas_src>

<mosaic_0001>
module attributes {stable_mosaic.version = 11 : i64} {
  func.func @single_layer_fwd_kernel(%arg0: memref<4x8xf32, #tpu.memory_space<vmem>>, %arg1: memref<4x1xi32, #tpu.memory_space<vmem>>, %arg2: memref<17x8xf32, #tpu.memory_space<vmem>>, %arg3: memref<8x128xf32, #tpu.memory_space<vmem>>) attributes {dimension_semantics = [], scalar_prefetch = 0 : i64, scratch_operands = 0 : i64, tpu.core_type = #tpu.core_type<tc>} {
    %c0 = arith.constant 0 : index
    %c0_0 = arith.constant 0 : index
    %0 = vector.load %arg0[%c0, %c0_0] : memref<4x8xf32, #tpu.memory_space<vmem>>, vector<4x8xf32>
    %1 = tpu.concatenate %0, %0 in 1 : vector<4x8xf32>, vector<4x8xf32> -> vector<4x16xf32>
    %c0_1 = arith.constant 0 : index
    %c0_2 = arith.constant 0 : index
    %2 = vector.load %arg2[%c0_1, %c0_2] : memref<17x8xf32, #tpu.memory_space<vmem>>, vector<16x8xf32>
    %c16 = arith.constant 16 : index
    %c0_3 = arith.constant 0 : index
    %3 = vector.load %arg2[%c16, %c0_3] : memref<17x8xf32, #tpu.memory_space<vmem>>, vector<1x8xf32>
    %cst = arith.constant dense<0.000000e+00> : vector<4x8xf32>
    %4 = tpu.matmul %1, %2, %cst {dimension_numbers = #tpu.dot_dimension_numbers<[1], [0], [0], [1], [0, 0, 1, 1], [], []>} : vector<4x16xf32>, vector<16x8xf32>, vector<4x8xf32> -> vector<4x8xf32>
    %5 = vector.broadcast %3 : vector<1x8xf32> to vector<4x8xf32>
    %6 = arith.addf %4, %5 : vector<4x8xf32>
    %c0_4 = arith.constant 0 : index
    %c0_5 = arith.constant 0 : index
    %7 = vector.load %arg1[%c0_4, %c0_5] : memref<4x1xi32, #tpu.memory_space<vmem>>, vector<4x1xi32>
    %8 = tpu.iota {dimensions = array<i32: 1>} : vector<4x8xi32>
    %9 = vector.broadcast %7 : vector<4x1xi32> to vector<4x8xi32>
    %10 = arith.cmpi eq, %8, %9 : vector<4x8xi32>
    %11 = arith.extui %10 : vector<4x8xi1> to vector<4x8xi32>
    %12 = arith.sitofp %11 : vector<4x8xi32> to vector<4x8xf32>
    %cst_6 = arith.constant dense<0xFF800000> : vector<4xf32>
    %13 = vector.multi_reduction <maximumf>, %6, %cst_6 [1] : vector<4x8xf32> to vector<4xf32>
    %14 = vector.shape_cast %13 : vector<4xf32> to vector<4x1xf32>
    %15 = vector.broadcast %14 : vector<4x1xf32> to vector<4x8xf32>
    %16 = arith.subf %6, %15 : vector<4x8xf32>
    %17 = math.exp %16 : vector<4x8xf32>
    %cst_7 = arith.constant dense<0.000000e+00> : vector<4xf32>
    %18 = vector.multi_reduction <add>, %17, %cst_7 [1] : vector<4x8xf32> to vector<4xf32>
    %19 = vector.shape_cast %18 : vector<4xf32> to vector<4x1xf32>
    %20 = math.log %19 : vector<4x1xf32>
    %21 = arith.addf %14, %20 : vector<4x1xf32>
    %22 = arith.mulf %6, %12 : vector<4x8xf32>
    %cst_8 = arith.constant dense<0.000000e+00> : vector<4xf32>
    %23 = vector.multi_reduction <add>, %22, %cst_8 [1] : vector<4x8xf32> to vector<4xf32>
    %24 = vector.shape_cast %23 : vector<4xf32> to vector<4x1xf32>
    %25 = arith.subf %21, %24 : vector<4x1xf32>
    %cst_9 = arith.constant dense<0.000000e+00> : vector<1xf32>
    %26 = vector.multi_reduction <add>, %25, %cst_9 [0] : vector<4x1xf32> to vector<1xf32>
    %27 = vector.shape_cast %26 : vector<1xf32> to vector<1x1xf32>
    %cst_10 = arith.constant 4.000000e+00 : f32
    %28 = vector.broadcast %cst_10 : f32 to vector<1x1xf32>
    %29 = arith.divf %27, %28 : vector<1x1xf32>
    %30 = vector.broadcast %14 : vector<4x1xf32> to vector<4x8xf32>
    %31 = arith.cmpf oeq, %6, %30 : vector<4x8xf32>
    %c8_i32 = arith.constant 8 : i32
    %32 = vector.broadcast %c8_i32 : i32 to vector<4x8xi32>
    %33 = arith.select %31, %8, %32 : vector<4x8xi1>, vector<4x8xi32>
    %cst_11 = arith.constant dense<2147483647> : vector<4xi32>
    %34 = vector.multi_reduction <minsi>, %33, %cst_11 [1] : vector<4x8xi32> to vector<4xi32>
    %35 = vector.shape_cast %34 : vector<4xi32> to vector<4x1xi32>
    %36 = arith.cmpi eq, %35, %7 : vector<4x1xi32>
    %37 = arith.extui %36 : vector<4x1xi1> to vector<4x1xi32>
    %38 = arith.sitofp %37 : vector<4x1xi32> to vector<4x1xf32>
    %cst_12 = arith.constant dense<0.000000e+00> : vector<1xf32>
    %39 = vector.multi_reduction <add>, %38, %cst_12 [0] : vector<4x1xf32> to vector<1xf32>
    %40 = vector.shape_cast %39 : vector<1xf32> to vector<1x1xf32>
    %cst_13 = arith.constant 4.000000e+00 : f32
    %41 = vector.broadcast %cst_13 : f32 to vector<1x1xf32>
    %42 = arith.divf %40, %41 : vector<1x1xf32>
    %43 = tpu.iota {dimensions = array<i32: 1>} : vector<8x128xi32>
    %c0_i32 = arith.constant 0 : i32
    %44 = vector.broadcast %c0_i32 : i32 to vector<8x128xi32>
    %45 = arith.cmpi eq, %43, %44 : vector<8x128xi32>
    %c1_i32 = arith.constant 1 : i32
    %46 = vector.broadcast %c1_i32 : i32 to vector<8x128xi32>
    %47 = arith.cmpi eq, %43, %46 : vector<8x128xi32>
    %cst_14 = arith.constant 0.000000e+00 : f32
    %48 = vector.shape_cast %42 : vector<1x1xf32> to vector<1x1xf32>
    %49 = vector.broadcast %48 : vector<1x1xf32> to vector<8x128xf32>
    %50 = vector.broadcast %cst_14 : f32 to vector<8x128xf32>
    %51 = arith.select %47, %49, %50 : vector<8x128xi1>, vector<8x128xf32>
    %52 = vector.shape_cast %29 : vector<1x1xf32> to vector<1x1xf32>
    %53 = vector.broadcast %52 : vector<1x1xf32> to vector<8x128xf32>
    %54 = arith.select %45, %53, %51 : vector<8x128xi1>, vector<8x128xf32>
    %c0_15 = arith.constant 0 : index
    %c0_16 = arith.constant 0 : index
    %55 = vector.load %arg3[%c0_15, %c0_16] : memref<8x128xf32, #tpu.memory_space<vmem>>, vector<8x128xf32>
    tpu.vector_store %arg3[%c0_15, %c0_16], %54 {strides = array<i32>} : memref<8x128xf32, #tpu.memory_space<vmem>>, vector<8x128xf32>,
    return
  }
}

</mosaic_0001>

<bundles_post_ra>
// kernel: single_layer_forward.1
= control target key start
LH: loop header
LB: loop body
LE: loop exit
PB: predicated region body
PF: predicated region fallthrough
CT: control target
= control target key end

     0   :  { %v206_v1 = vmov 0.0   ;;  %vm207_vm0 = vmmov 0   ;;  %s208_s18 = smov 8   ;;  %vm19_vm1 = vcmask 64512   ;;  %vm28_vm2 = vcmask 130048   ;;  %s263_s0 = inlined_call_operand.vmem [shape: f32[4,8], index: 0, kind: input, shape index: {}]   ;;  %s264_s2 = inlined_call_operand.vmem [shape: f32[17,8], index: 2, kind: input, shape index: {}]   ;;  %s265_s1 = inlined_call_operand.vmem [shape: s32[4,1], index: 1, kind: input, shape index: {}]   ;;  %s266_s3 = inlined_call_operand.vmem [shape: f32[8,128], index: 3, kind: output, shape index: {}]  }
   0x1   :  { %v14_v0 = vld [vmem:[%s263_s0] sm:$0xf]  ;;  %189 = vmatprep.subr.mxu0 %v206_v1  ;;  %v22_v2 = vld [vmem:[%s264_s2 + $0x8] sm:$0xff]  ;;  %193 = vmatprep.mubr.msk.f32.mxu0 %vm207_vm0, %v206_v1  ;;  %v182_v6 = vld [vmem:[%s264_s2 + $0x10] ss:$0 sm:$0xff]  ;;  %vm111_vm3 = vcmask 60416   ;;  %v103_v12 = vlaneseq }
   0x2   :  { %v21_v3 = vld [vmem:[%s264_s2] sm:$0xff]  ;;  %16 = vrot.lane.b32.xlu0 %v14_v0, %s208_s18  ;;  %190 = vmatpush3.msra.mxu0 %v22_v2  ;;  %v209_v11 = vmov 0   ;;  %vm159_vm7 = vcmask 3072   ;;  %vm129_vm9 = vcmask 1043456  }
   0x3   :  { %191 = vmatprep.subr.mxu0 %v206_v1  ;;  %200 = vset.pattern.permute.xlu1 %v209_v11  ;;  %v246_v13 = vand.u32 127, %v103_v12  ;;  %v102_v23 = vld [vmem:[%s265_s1] sm:$0xf] }
   0x4   :  { %192 = vmatpush3.msra.mxu0 %v21_v3  ;;  %201 = vset.pattern.permute.xlu0 %v209_v11 }
   0x5   :  { %vm169_vm10 = vcmp.eq.s32.totalorder %v246_v13, 1  ;;  %vm168_vm11 = vcmp.eq.s32.totalorder %v246_v13, 0 }
  0x74   :  { %v17_v4 = vpop.permute.xlu0 %16 }
  0x75   :  { %v20_v5 = vsel %vm19_vm1, %v14_v0, %v17_v4 }
  0x76   :  { %194 = vmatmul.mubr.msk.f32.vlgmr.msra.gmra.mxu0 %vm28_vm2, %v20_v5 }
 0x136   :  { %v98_v7 = vpop.f32.mrf.mxu0 }
 0x137   :  { %v99_v8 = vadd.f32 %v182_v6, %v98_v7 }
 0x138   :  { %v195_v9 = vpop.f32.mrf.mxu0 }
 0x139   :  { %v112_v10 = vsel %vm111_vm3, %v99_v8, -inf }
 0x13a   :  { %113 = vmax.xlane.f32.xlu0 %v112_v10 }
 0x1c3   :  { %v114_v14 = vpop.xlane.xlu0 %113 }
 0x1c4   :  { %v115_v15 = vsub.f32 %v99_v8, %v114_v14  ;;  %vm139_vm4 = vcmp.eq.f32.partialorder %v99_v8, %v114_v14 }
 0x1c5   :  { %v140_v16 = vsel %vm139_vm4, %v246_v13, 8 }
 0x1c6   :  { %v116_v17 = vmul.f32 1.442695, %v115_v15  ;;  %v141_v18 = vsel %vm111_vm3, %v140_v16, 2147483647 }
 0x1c7   :  { %v143_v19 = vshra.s32 %v141_v18, 16  ;;  %v142_v24 = vand.u32 65535, %v141_v18 }
 0x1c8   :  { %202 = vpow2.f32 %v116_v17 }
 0x1c9   :  { %v145_v20 = vcvt.s32.f32 %v143_v19  ;;  %v144_v26 = vcvt.s32.f32 %v142_v24 }
 0x1cb   :  { %146 = vmin.xlane.f32.xlu1 %v145_v20 }
 0x1d5   :  { %v203_v21 = vpop.eup %202 }
 0x1d6   :  { %v118_v22 = vsel %vm111_vm3, %v203_v21, 0.0 }
 0x1d7   :  { %119 = vadd.xlane.f32.xlu0 %v118_v22 }
 0x1dc   :  { %106 = vperm.xlu1 %200, %v102_v23  }
 0x254   :  { %v147_v25 = vpop.xlane.xlu1 %146 }
 0x255   :  { %vm148_vm5 = vcmp.eq.f32.partialorder %v145_v20, %v147_v25  ;;  %v153_v32 = vcvt.f32.s32 %v147_v25 }
 0x256   :  { %v149_v27 = vsel %vm148_vm5, %v144_v26, inf }
 0x257   :  { %150 = vmin.xlane.f32.xlu1 %v149_v27  ;;  %v154_v34 = vshll.u32 %v153_v32, 16 }
 0x258   :  { %v107_v28 = vpop.permute.xlu1 %106 }
 0x259   :  { %vm108_vm6 = vcmp.eq.s32.totalorder %v246_v13, %v107_v28 }
 0x25a   :  { %v184_v29 = vsel %vm108_vm6, 1.0, %v206_v1 }
 0x25b   :  { %v124_v30 = vmul.f32 %v184_v29, %v99_v8 }
 0x25d   :  { %v125_v31 = vsel %vm111_vm3, %v124_v30, 0.0 }
 0x25e   :  { %126 = vadd.xlane.f32.xlu0 %v125_v31 }
 0x260   :  { %v120_v46 = vpop.xlane.xlu0 %119 }
 0x261   :  { %204 = vlog2.f32 %v120_v46 }
 0x26e   :  { %v205_v47 = vpop.eup %204 }
 0x26f   :  { %v122_v48 = vmul.f32 0.6931472, %v205_v47 }
 0x271   :  { %v123_v50 = vadd.f32 %v122_v48, %v114_v14 }
 0x2e0   :  { %v151_v33 = vpop.xlane.xlu1 %150 }
 0x2e1   :  { %v152_v35 = vcvt.f32.s32 %v151_v33 }
 0x2e3   :  { %v155_v36 = vadd.s32 %v154_v34, %v152_v35 }
 0x2e5   :  { %vm156_vm8 = vcmp.eq.s32.totalorder %v155_v36, %v102_v23 }
 0x2e6   :  { %v185_v37 = vsel %vm156_vm8, 1.0, %v206_v1 }
 0x2e7   :  { %v160_v38 = vsel %vm159_vm7, %v185_v37, 0.0  ;;  %v127_v49 = vpop.xlane.xlu0 %126 }
 0x2e8   :  { %v161_v39 = vrot.slane %v160_v38, 4  ;;  %v128_v51 = vsub.f32 %v123_v50, %v127_v49 }
 0x2ea   :  { %v162_v40 = vadd.f32 %v161_v39, %v160_v38  ;;  %v130_v52 = vsel %vm129_vm9, %v128_v51, 0.0 }
 0x2eb   :  { %v131_v53 = vrot.slane %v130_v52, 4 }
 0x2ec   :  { %v163_v41 = vrot.slane %v162_v40, 2 }
 0x2ed   :  { %v132_v54 = vadd.f32 %v131_v53, %v130_v52 }
 0x2ee   :  { %v164_v42 = vadd.f32 %v163_v41, %v162_v40 }
 0x2ef   :  { %v133_v55 = vrot.slane %v132_v54, 2 }
 0x2f0   :  { %v165_v43 = vrot.slane %v164_v42, 1 }
 0x2f1   :  { %v134_v56 = vadd.f32 %v133_v55, %v132_v54 }
 0x2f2   :  { %v166_v44 = vadd.f32 %v165_v43, %v164_v42 }
 0x2f3   :  { %v135_v57 = vrot.slane %v134_v56, 1 }
 0x2f4   :  { %v167_v45 = vmul.f32 0.25, %v166_v44 }
 0x2f5   :  { %v136_v58 = vadd.f32 %v135_v57, %v134_v56 }
 0x2f6   :  { %172 = vperm.xlu0 %201, %v167_v45  }
 0x2f7   :  { %v138_v59 = vmul.f32 0.25, %v136_v58 }
 0x371   :  { %v173_v60 = vpop.permute.xlu0 %172 }
 0x372   :  { %v175_v61 = vsel %vm169_vm10, %v173_v60, 0.0 }
 0x373   :  { %v176_v62 = vsel %vm168_vm11, %v138_v59, %v175_v61 }
 0x374   :  { %177 = vst [vmem:[%s266_s3] sm:$0xff] %v176_v62 }

</bundles_post_ra>
